<compile_context>
chip_gen: v7x
topology: tpu7x:2x2x1
jax: 0.10.0
libtpu: 0.0.40
codegen_flags: <defaults>
</compile_context>

<pallas_src>
import math

import jax
import jax.numpy as jnp
from jax.experimental import pallas as pl
from jax.experimental.pallas import tpu as pltpu

NEMB = 42          # embedding dim C
HIDDEN = 4 * NEMB  # 168
DROPOUT = 0.0      # p = 0.0 -> dropout is the identity in forward

_SQRT_2_OVER_PI = 0.7978845608028654  # sqrt(2/pi)


def _round_up(x, m):
    return ((x + m - 1) // m) * m


def _gelu_tanh(h):
    # PyTorch nn.GELU(approximate='tanh'):
    #   0.5 * x * (1 + tanh( sqrt(2/pi) * (x + 0.044715 * x^3) ))
    return 0.5 * h * (1.0 + jnp.tanh(_SQRT_2_OVER_PI * (h + 0.044715 * h * h * h)))


def _ffn_kernel(x_ref, w1_ref, b1_ref, w2_ref, b2_ref, o_ref):
    # x_ref: (TM, C); w1_ref: (C, H); b1_ref: (1, H)
    # w2_ref: (H, C); b2_ref: (1, C); o_ref: (TM, C)
    x = x_ref[...]

    # Linear 1 (fused bias add) -> MXU.
    h = jnp.dot(x, w1_ref[...], preferred_element_type=jnp.float32) + b1_ref[...]

    # GELU (tanh approximation); tanh runs on the EUP slot, kept in f32.
    g = _gelu_tanh(h)

    # Linear 2 (fused bias add) -> MXU.  Dropout(p=0.0) is the identity.
    # TODO(synk): for p > 0 (training), add pltpu.prng_seed + stateful_bernoulli masking.
    y = jnp.dot(g, w2_ref[...], preferred_element_type=jnp.float32) + b2_ref[...]
    o_ref[...] = y.astype(o_ref.dtype)


@jax.jit
def ffn_forward(x, w1, b1, w2, b2):
    """x: (B, T, C); w1: (C, 4C); b1: (4C,); w2: (4C, C); b2: (C,) -> (B, T, C).

    Weights are stored transposed relative to PyTorch nn.Linear.weight, i.e.
    (in_features, out_features), so the kernel computes x @ W directly.
    """
    B, T, C = x.shape
    H = w1.shape[1]
    assert w1.shape == (C, H) and b1.shape == (H,)
    assert w2.shape == (H, C) and b2.shape == (C,)

    M = B * T
    x2 = x.reshape(M, C)          # free reshape, no HBM copy of consequence
    b1r = b1.reshape(1, H)
    b2r = b2.reshape(1, C)

    # Row tile: big (<=1024) to amortize the ~0.35us per-grid-step overhead,
    # but always >=2 grid steps when M > 8 so the "parallel" axis can shard
    # across v7x's two TensorCores.  (Sublane block dim must be a multiple of
    # 8, so M <= 8 necessarily runs as a single step.)
    if M <= 8:
        tm = 8
    else:
        tm = min(1024, _round_up(pl.cdiv(M, 2), 8))
    grid = (pl.cdiv(M, tm),)

    # Internally-padded MXU dims (for the cost estimate only; no HBM padding).
    C_pad = _round_up(C, 128)     # 42  -> 128
    H_pad = _round_up(H, 128)     # 168 -> 256

    out = pl.pallas_call(
        _ffn_kernel,
        out_shape=jax.ShapeDtypeStruct((M, C), x.dtype),
        grid_spec=pltpu.PrefetchScalarGridSpec(
            num_scalar_prefetch=0,
            grid=grid,
            in_specs=[
                pl.BlockSpec((tm, C), lambda i: (i, 0)),   # x rows
                pl.BlockSpec((C, H), lambda i: (0, 0)),    # w1 (resident)
                pl.BlockSpec((1, H), lambda i: (0, 0)),    # b1 (resident)
                pl.BlockSpec((H, C), lambda i: (0, 0)),    # w2 (resident)
                pl.BlockSpec((1, C), lambda i: (0, 0)),    # b2 (resident)
            ],
            out_specs=pl.BlockSpec((tm, C), lambda i: (i, 0)),
        ),
        compiler_params=pltpu.CompilerParams(
            dimension_semantics=("parallel",)),
        cost_estimate=pl.CostEstimate(
            flops=2 * M * C_pad * H_pad + 2 * M * H_pad * C_pad,
            transcendentals=M * H_pad,
            bytes_accessed=4 * (2 * M * C + 2 * C * H + H + C),
        ),
    )(x2, w1, b1r, w2, b2r)

    return out.reshape(B, T, C)


def reference_ffn(x, w1, b1, w2, b2):
    """Pure-JAX reference mirroring the PyTorch forward."""
    h = x @ w1 + b1
    g = _gelu_tanh(h)
    y = g @ w2 + b2
    return y  # dropout(p=0.0) is the identity


if __name__ == "__main__":
    B, T, C = 2, 8, NEMB
    H = HIDDEN

    key = jax.random.PRNGKey(0)
    kx, kw1, kb1, kw2, kb2 = jax.random.split(key, 5)

    x = jax.random.normal(kx, (B, T, C), dtype=jnp.float32)

    # Deterministic init matching nn.Linear(in, out):
    # weight, bias ~ U(-1/sqrt(in_features), 1/sqrt(in_features)); weights
    # stored transposed as (in, out).
    bound1 = 1.0 / math.sqrt(C)
    w1 = jax.random.uniform(kw1, (C, H), jnp.float32, -bound1, bound1)
    b1 = jax.random.uniform(kb1, (H,), jnp.float32, -bound1, bound1)
    bound2 = 1.0 / math.sqrt(H)
    w2 = jax.random.uniform(kw2, (H, C), jnp.float32, -bound2, bound2)
    b2 = jax.random.uniform(kb2, (C,), jnp.float32, -bound2, bound2)

    out = ffn_forward(x, w1, b1, w2, b2)
    out = jax.block_until_ready(out)

    ref = reference_ffn(x, w1, b1, w2, b2)
    assert out.shape == (B, T, C)
    assert jnp.allclose(out, ref, atol=1e-5, rtol=1e-5), "mismatch vs reference"

    print("KERNEL_OK")
</pallas_src>

<mosaic_0001>
module attributes {stable_mosaic.version = 11 : i64} {
  func.func @_ffn_kernel(%arg0: i32, %arg1: memref<8x42xf32, #tpu.memory_space<vmem>>, %arg2: memref<42x168xf32, #tpu.memory_space<vmem>>, %arg3: memref<1x168xf32, #tpu.memory_space<vmem>>, %arg4: memref<168x42xf32, #tpu.memory_space<vmem>>, %arg5: memref<1x42xf32, #tpu.memory_space<vmem>>, %arg6: memref<8x42xf32, #tpu.memory_space<vmem>>) attributes {dimension_semantics = [#tpu.dimension_semantics<parallel>], iteration_bounds = array<i64: 2>, scalar_prefetch = 0 : i64, scratch_operands = 0 : i64, tpu.core_type = #tpu.core_type<tc>, window_params = [{transform_indices = @transform_0, window_bounds = array<i64: 8, 42>}, {pipeline_mode = #tpu.pipeline_mode<synchronous>, transform_indices = @transform_1, window_bounds = array<i64: 42, 168>}, {pipeline_mode = #tpu.pipeline_mode<synchronous>, transform_indices = @transform_2, window_bounds = array<i64: 1, 168>}, {pipeline_mode = #tpu.pipeline_mode<synchronous>, transform_indices = @transform_3, window_bounds = array<i64: 168, 42>}, {pipeline_mode = #tpu.pipeline_mode<synchronous>, transform_indices = @transform_4, window_bounds = array<i64: 1, 42>}, {transform_indices = @transform_5, window_bounds = array<i64: 8, 42>}]} {
    %c0 = arith.constant 0 : index
    %c0_0 = arith.constant 0 : index
    %0 = vector.load %arg1[%c0, %c0_0] : memref<8x42xf32, #tpu.memory_space<vmem>>, vector<8x42xf32>
    %c0_1 = arith.constant 0 : index
    %c0_2 = arith.constant 0 : index
    %1 = vector.load %arg2[%c0_1, %c0_2] : memref<42x168xf32, #tpu.memory_space<vmem>>, vector<42x168xf32>
    %cst = arith.constant dense<0.000000e+00> : vector<8x168xf32>
    %2 = tpu.matmul %0, %1, %cst {dimension_numbers = #tpu.dot_dimension_numbers<[1], [0], [0], [1], [0, 0, 1, 1], [], []>} : vector<8x42xf32>, vector<42x168xf32>, vector<8x168xf32> -> vector<8x168xf32>
    %c0_3 = arith.constant 0 : index
    %c0_4 = arith.constant 0 : index
    %3 = vector.load %arg3[%c0_3, %c0_4] : memref<1x168xf32, #tpu.memory_space<vmem>>, vector<1x168xf32>
    %4 = vector.broadcast %3 : vector<1x168xf32> to vector<8x168xf32>
    %5 = arith.addf %2, %4 : vector<8x168xf32>
    %cst_5 = arith.constant 5.000000e-01 : f32
    %6 = vector.broadcast %cst_5 : f32 to vector<8x168xf32>
    %7 = arith.mulf %6, %5 : vector<8x168xf32>
    %cst_6 = arith.constant 4.471500e-02 : f32
    %8 = vector.broadcast %cst_6 : f32 to vector<8x168xf32>
    %9 = arith.mulf %8, %5 : vector<8x168xf32>
    %10 = arith.mulf %9, %5 : vector<8x168xf32>
    %11 = arith.mulf %10, %5 : vector<8x168xf32>
    %12 = arith.addf %5, %11 : vector<8x168xf32>
    %cst_7 = arith.constant 0.797884583 : f32
    %13 = vector.broadcast %cst_7 : f32 to vector<8x168xf32>
    %14 = arith.mulf %13, %12 : vector<8x168xf32>
    %15 = math.tanh %14 : vector<8x168xf32>
    %cst_8 = arith.constant 1.000000e+00 : f32
    %16 = vector.broadcast %cst_8 : f32 to vector<8x168xf32>
    %17 = arith.addf %16, %15 : vector<8x168xf32>
    %18 = arith.mulf %7, %17 : vector<8x168xf32>
    %c0_9 = arith.constant 0 : index
    %c0_10 = arith.constant 0 : index
    %19 = vector.load %arg4[%c0_9, %c0_10] : memref<168x42xf32, #tpu.memory_space<vmem>>, vector<168x42xf32>
    %cst_11 = arith.constant dense<0.000000e+00> : vector<8x42xf32>
    %20 = tpu.matmul %18, %19, %cst_11 {dimension_numbers = #tpu.dot_dimension_numbers<[1], [0], [0], [1], [0, 0, 1, 1], [], []>} : vector<8x168xf32>, vector<168x42xf32>, vector<8x42xf32> -> vector<8x42xf32>
    %c0_12 = arith.constant 0 : index
    %c0_13 = arith.constant 0 : index
    %21 = vector.load %arg5[%c0_12, %c0_13] : memref<1x42xf32, #tpu.memory_space<vmem>>, vector<1x42xf32>
    %22 = vector.broadcast %21 : vector<1x42xf32> to vector<8x42xf32>
    %23 = arith.addf %20, %22 : vector<8x42xf32>
    %c0_14 = arith.constant 0 : index
    %c0_15 = arith.constant 0 : index
    %24 = vector.load %arg6[%c0_14, %c0_15] : memref<8x42xf32, #tpu.memory_space<vmem>>, vector<8x42xf32>
    tpu.vector_store %arg6[%c0_14, %c0_15], %23 {strides = array<i32>} : memref<8x42xf32, #tpu.memory_space<vmem>>, vector<8x42xf32>,
    return
  }
  func.func @transform_0(%arg0: i32) -> (i32, i32) {
    %c0_i32 = arith.constant 0 : i32
    %c0_i32_0 = arith.constant 0 : i32
    return %arg0, %c0_i32 : i32, i32
  }
  func.func @transform_1(%arg0: i32) -> (i32, i32) {
    %c0_i32 = arith.constant 0 : i32
    %c0_i32_0 = arith.constant 0 : i32
    %c0_i32_1 = arith.constant 0 : i32
    return %c0_i32, %c0_i32_0 : i32, i32
  }
  func.func @transform_2(%arg0: i32) -> (i32, i32) {
    %c0_i32 = arith.constant 0 : i32
    %c0_i32_0 = arith.constant 0 : i32
    %c0_i32_1 = arith.constant 0 : i32
    return %c0_i32, %c0_i32_0 : i32, i32
  }
  func.func @transform_3(%arg0: i32) -> (i32, i32) {
    %c0_i32 = arith.constant 0 : i32
    %c0_i32_0 = arith.constant 0 : i32
    %c0_i32_1 = arith.constant 0 : i32
    return %c0_i32, %c0_i32_0 : i32, i32
  }
  func.func @transform_4(%arg0: i32) -> (i32, i32) {
    %c0_i32 = arith.constant 0 : i32
    %c0_i32_0 = arith.constant 0 : i32
    %c0_i32_1 = arith.constant 0 : i32
    return %c0_i32, %c0_i32_0 : i32, i32
  }
  func.func @transform_5(%arg0: i32) -> (i32, i32) {
    %c0_i32 = arith.constant 0 : i32
    %c0_i32_0 = arith.constant 0 : i32
    return %arg0, %c0_i32 : i32, i32
  }
}

</mosaic_0001>

<bundles_post_ra>
// kernel: ffn_forward.1
= control target key start
LH: loop header
LB: loop body
LE: loop exit
PB: predicated region body
PF: predicated region fallthrough
CT: control target
= control target key end

     0   :  { %10 = vsyncpa [#allocation3], 0  ;;  %s943_s0 = inlined_call_operand.vmem [shape: f32[16,42], index: 0, kind: input, shape index: {}]   ;;  %s944_s1 = inlined_call_operand.vmem [shape: f32[42,168], index: 1, kind: input, shape index: {}]   ;;  %s945_s2 = inlined_call_operand.vmem [shape: f32[1,168], index: 2, kind: input, shape index: {}]   ;;  %s946_s3 = inlined_call_operand.vmem [shape: f32[168,42], index: 3, kind: input, shape index: {}]   ;;  %s947_s4 = inlined_call_operand.vmem [shape: f32[1,42], index: 4, kind: input, shape index: {}]   ;;  %s948_s5 = inlined_call_operand.hbm [shape: f32[16,42], index: 5, kind: output, shape index: {}]  }
   0x1   :  { %12 = vsyncpa [#allocation3 + $0x1], 0  ;;  %s724_s18 = smov 0   ;;  %s726_s19 = smov 0  }
   0x2   :  { %s728_s20 = smov 0   ;;  %s730_s21 = smov 0  }
   0x3 LB: > { %s745_s22 = sadd.s32 4294967295, %s688_s21   ;;  %s521_s23 = sadd.s32 4294967294, %s688_s21   ;;  %s688_s21 = sphi %s730_s21, %s954_s21   ;;  %s684_s20 = sphi %s728_s20, %s953_s20   ;;  %s680_s19 = sphi %s726_s19, %s952_s19   ;;  %s676_s18 = sphi %s724_s18, %s951_s18  }
   0x4   : > { %s749_s24 = sadd.s32 1, %s688_s21   ;;  %s135_s25 = sadd.s32 1, %s684_s20 }
   0x5   : > { %s132_s26 = ssub.s32 %s688_s21, %s749_s24  ;;  %p145_p0 = scmp.ne.s32.totalorder %s684_s20, %s680_s19 }
   0x6   : > { %p133_p1 = scmp.eq.s32.totalorder %s132_s26, 0  ;;  %p146_p2 = scmp.eq.s32.totalorder %s745_s22, 1 }
   0x7   : > { %p151_p3 = scmp.ne.s32.totalorder %s680_s19, %s676_s18  ;;  %p152_p4 = scmp.eq.s32.totalorder %s521_s23, 1 }
   0x8   : > { %s760_s27 = scalar_select %p133_p1, %s684_s20, %s135_s25  }
   0x9   : > { %p762_p5 = por %p146_p2, %p145_p0  ;;  %p766_p6 = por %p152_p4, %p151_p3 }
   0xa   : > { %p524_p7 = scmp.ge.s32.totalorder %s688_s21, 1  ;;  %p189_p8 = scmp.lt.s32.totalorder %s688_s21, 3 }
   0xc   : > { %p190_p9 = pnand %p524_p7, %p189_p8 }
   0xd   : > { %v222_v0 = vld [vmem:[%s944_s1 + $0x8] sm:$0xff] (!%p190_p9)  ;;  %v224_v1 = vld [vmem:[%s944_s1 + $0x18] sm:$0xff] (!%p190_p9)  ;;  %v221_v2 = vld [vmem:[%s944_s1] sm:$0xff] (!%p190_p9)  ;;  %v690_v7 = vmov (!%p190_p9), 0.0   ;;  %p216_p10 = scmp.lt.s32.totalorder (!%p190_p9), %s745_s22, 1  ;;  %v691_v13 = vmov (!%p190_p9), 0.0|0.0   ;;  %v235_v52 = vlaneseq (!%p190_p9) }
   0xe   : > { %193 = sbr.rel (%p190_p9) target bundleno = 497 (0x1f1), region = 40  ;;  %v536_v3 = vpack.c.bf16 (!%p190_p9), %v224_v1, %v222_v0  ;;  %v223_v4 = vld [vmem:[%s944_s1 + $0x10] sm:$0xff] (!%p190_p9)  ;;  %v226_v5 = vld [vmem:[%s944_s1 + $0x28] sm:$0xff] (!%p190_p9)  ;;  %v228_v6 = vld [vmem:[%s944_s1 + $0x38] sm:$0xff] (!%p190_p9)  ;;  %320 = vmatprep.mubr.f32.mxu0 (!%p190_p9), %v690_v7  ;;  %550 = vmatprep.subr.bf16.mxu1 (!%p190_p9), %v691_v13  ;;  %vm249_vm0 = vcmask (!%p190_p9), 1041408   ;;  %vm692_vm1 = vmmov (!%p190_p9), 1  }
   0xf   : > { %v538_v8 = vpack.c.bf16 (!%p190_p9), %v223_v4, %v221_v2  ;;  %v540_v9 = vpack.c.bf16 (!%p190_p9), %v228_v6, %v226_v5  ;;  %v225_v10 = vld [vmem:[%s944_s1 + $0x20] sm:$0xff] (!%p190_p9)  ;;  %v227_v11 = vld [vmem:[%s944_s1 + $0x30] sm:$0xff] (!%p190_p9)  ;;  %v230_v12 = vld [vmem:[%s944_s1 + $0x48] sm:$0xff] (!%p190_p9)  ;;  %vm245_vm3 = vcmask (!%p190_p9), 343040   ;;  %v236_v53 = vshrl.u32 (!%p190_p9), %v235_v52, 7  ;;  %s533_s23 = sshll.u32 (!%p190_p9), %s745_s22, 7 }
  0x10   : > { %537 = vmatprep.subr.bf16.mxu0 (!%p190_p9), %v536_v3  ;;  %v232_v14 = vld [vmem:[%s944_s1 + $0x58] sm:$0x3] (!%p190_p9)  ;;  %v542_v15 = vpack.c.bf16 (!%p190_p9), %v227_v11, %v225_v10  ;;  %v229_v16 = vld [vmem:[%s944_s1 + $0x40] sm:$0xff] (!%p190_p9)  ;;  %v346_v18 = vld [vmem:[%s946_s3 + $0x8] sm:$0xff] (!%p190_p9)  ;;  %vm373_vm4 = vcmask (!%p190_p9), 326656   ;;  %s900_s7 = scalar_lea.hbm (!%p190_p9), %s948_s5, %s533_s23 }
  0x11   : > { %539 = vmatpush1.bf16.msra.mxu0 (!%p190_p9), %v538_v8  ;;  %v345_v17 = vld [vmem:[%s946_s3] sm:$0xff] (!%p190_p9)  ;;  %v544_v19 = vpack.c.bf16 (!%p190_p9), %v232_v14, %v230_v12  ;;  %v231_v20 = vld [vmem:[%s944_s1 + $0x50] sm:$0x3] (!%p190_p9)  ;;  %v348_v23 = vld [vmem:[%s946_s3 + $0x18] sm:$0xff] (!%p190_p9)  ;;  %v237_v54 = vsub.s32 (!%p190_p9), 0, %v236_v53  ;;  %v241_v56 = vsub.s32 (!%p190_p9), 1, %v236_v53 }
  0x12   : > { %541 = vmatprep.subr.bf16.mxu0 (!%p190_p9), %v540_v9  ;;  %v551_v21 = vpack.c.bf16 (!%p190_p9), %v346_v18, %v345_v17  ;;  %v347_v22 = vld [vmem:[%s946_s3 + $0x10] sm:$0xff] (!%p190_p9)  ;;  %vm545_vm2 = vmpackc.low (!%p190_p9), %vm249_vm0, %vm692_vm1  ;;  %v547_v25 = vpack.c.bf16 (!%p190_p9), %v231_v20, %v229_v16  ;;  %v349_v26 = vld [vmem:[%s946_s3 + $0x20] sm:$0xff] (!%p190_p9) }
  0x13   : > { %v554_v24 = vpack.c.bf16 (!%p190_p9), %v348_v23, %v347_v22  ;;  %v350_v27 = vld [vmem:[%s946_s3 + $0x28] sm:$0xff] (!%p190_p9)  ;;  %v351_v30 = vld [vmem:[%s946_s3 + $0x30] sm:$0xff] (!%p190_p9)  ;;  %v352_v31 = vld [vmem:[%s946_s3 + $0x38] sm:$0xff] (!%p190_p9) }
  0x14   : > { %552 = vmatpush1.bf16.msra.mxu1 (!%p190_p9), %v551_v21  ;;  %v557_v28 = vpack.c.bf16 (!%p190_p9), %v350_v27, %v349_v26  ;;  %v560_v32 = vpack.c.bf16 (!%p190_p9), %v352_v31, %v351_v30  ;;  %v353_v33 = vld [vmem:[%s946_s3 + $0x40] sm:$0xff] (!%p190_p9)  ;;  %v354_v34 = vld [vmem:[%s946_s3 + $0x48] sm:$0xff] (!%p190_p9)  ;;  %v355_v36 = vld [vmem:[%s946_s3 + $0x50] sm:$0xff] (!%p190_p9) }
  0x15   : > { %s217_s9 = scalar_select %p216_p10, %s745_s22, 1  ;;  %543 = vmatpush1.bf16.msra.mxu0 %v542_v15  ;;  %553 = vmatprep.subr.bf16.mxu1 %v691_v13  ;;  %v563_v35 = vpack.c.bf16 %v354_v34, %v353_v33  ;;  %v356_v37 = vld [vmem:[%s946_s3 + $0x58] sm:$0xff]  ;;  %v357_v39 = vld [vmem:[%s946_s3 + $0x60] sm:$0xff]  ;;  %v358_v40 = vld [vmem:[%s946_s3 + $0x68] sm:$0xff] }
  0x16   : > { %546 = vmatprep.subr.msk.bf16.mxu0 %vm545_vm2, %v544_v19  ;;  %v566_v38 = vpack.c.bf16 %v356_v37, %v355_v36  ;;  %v569_v41 = vpack.c.bf16 %v358_v40, %v357_v39  ;;  %v359_v42 = vld [vmem:[%s946_s3 + $0x70] sm:$0xff]  ;;  %v360_v43 = vld [vmem:[%s946_s3 + $0x78] sm:$0xff]  ;;  %v361_v45 = vld [vmem:[%s946_s3 + $0x80] sm:$0xff]  ;;  %s693_s22 = smov [#allocation2]  }
  0x17   : > { %s526_s6 = sshll.u32 %s217_s9, 3  ;;  %v572_v44 = vpack.c.bf16 %v360_v43, %v359_v42  ;;  %v362_v46 = vld [vmem:[%s946_s3 + $0x88] sm:$0xff]  ;;  %v363_v48 = vld [vmem:[%s946_s3 + $0x90] sm:$0xff]  ;;  %v364_v49 = vld [vmem:[%s946_s3 + $0x98] sm:$0xff]  ;;  %s213_s9 = sand.u32 1, %s680_s19  }
  0x18   : > { %s219_s14 = scalar_lea.vmem %s943_s0, %s526_s6  ;;  %555 = vmatpush1.bf16.msra.mxu1 %v554_v24  ;;  %v575_v47 = vpack.c.bf16 %v362_v46, %v361_v45  ;;  %v578_v50 = vpack.c.bf16 %v364_v49, %v363_v48  ;;  %v365_v51 = vld [vmem:[%s946_s3 + $0xa0] sm:$0xff]  ;;  %s525_s15 = sshll.u32 %s213_s9, 3 }
  0x19   : > { %549 = vmatpush1.bf16.msk.msra.mxu0 %vm545_vm2, %v547_v25  ;;  %v220_v29 = vld [vmem:[%s219_s14] sm:$0xff]  ;;  %556 = vmatprep.subr.bf16.mxu1 %v691_v13  ;;  %s215_s25 = scalar_lea.vmem [#allocation2], %s525_s15  ;;  %s449_s8 = scalar_lea.sflag [#allocation3], %s213_s9 }
  0x1a   : > { %v233_v55 = vld [vmem:[%s945_s2] sm:$0x3]  ;;  %s462_s26 = sshll.u32 %s215_s25, 4  ;;  %s630_s11 = sshll.u32 %s693_s22, 4  ;;  %s902_s26 = int_to_ptr.vmem [resolvable:$true] %s462_s26  ;;  %s631_s11 = int_to_ptr.vmem [resolvable:$false] %s630_s11 }
  0x1b   : > { %v238_v57 = vrot.slane %v233_v55, %v237_v54  ;;  %v242_v58 = vrot.slane %v233_v55, %v241_v56  ;;  %v530_v17 = vld [vmem:[%s947_s4] ss:$0 sm:$0xff]  ;;  %s626_s10 = scalar_lea.vmem %s902_s26, 128  ;;  %s632_s12 = scalar_lea.vmem %s631_s11, 256 }
  0x1c   : > { %529 = vmatmul.mubr.msk.f32.vlgmr.msra.gmra.mrb[0].mxu0 %vm245_vm3, %v220_v29  ;;  %558 = vmatpush1.bf16.msra.mxu1 %v557_v28  ;;  %p627_p11 = scmp.ne.s32.totalorder %s902_s26, %s626_s10  ;;  %p633_p0 = scmp.lt.s32.totalorder %s902_s26, %s631_s11 }
  0x1d   : > { %559 = vmatprep.subr.bf16.mxu1 %v691_v13  ;;  %p634_p1 = scmp.lt.s32.totalorder %s632_s12, %s626_s10 }
  0x1e   : > { %p628_p12 = pnand %p627_p11, %p762_p5 }
  0x1f   : > { %p635_p2 = por %p634_p1, %p633_p0 }
  0x20   : > { %561 = vmatpush1.bf16.msra.mxu1 %v560_v32  ;;  %p629_p13 = pneg %p628_p12 }
  0x21   : > { %562 = vmatprep.subr.bf16.mxu1 %v691_v13 }
  0x22   : > { %p636_p3 = pnand %p635_p2, %p629_p13 }
  0x24   : > { %564 = vmatpush1.bf16.msra.mxu1 %v563_v35 }
  0x25   : > { %565 = vmatprep.subr.bf16.mxu1 %v691_v13 }
  0x28   : > { %567 = vmatpush1.bf16.msra.mxu1 %v566_v38 }
  0x29   : > { %568 = vmatprep.subr.bf16.mxu1 %v691_v13 }
  0x2c   : > { %570 = vmatpush1.bf16.msra.mxu1 %v569_v41 }
  0x2d   : > { %571 = vmatprep.subr.bf16.mxu1 %v691_v13 }
  0x30   : > { %573 = vmatpush1.bf16.msra.mxu1 %v572_v44 }
  0x31   : > { %574 = vmatprep.subr.bf16.mxu1 %v691_v13 }
  0x34   : > { %576 = vmatpush1.bf16.msra.mxu1 %v575_v47 }
  0x35   : > { %577 = vmatprep.subr.bf16.mxu1 %v691_v13 }
  0x38   : > { %579 = vmatpush1.bf16.msra.mxu1 %v578_v50 }
  0x39   : > { %417 = vmatprep.subr.mxu1 %v690_v7 }
  0x3c   : > { %418 = vmatpush1.msra.mxu1 %v365_v51 }
  0xef   : > { %v322_v59 = vpop.f32.mrb[0].mxu0 }
  0xf0   : > { %v323_v60 = vadd.f32 %v322_v59, %v238_v57  ;;  %v324_v61 = vpop.f32.mrb[1].mxu0 }
  0xf1   : > { %v325_v62 = vadd.f32 %v324_v61, %v242_v58 }
  0xf2   : > { %v329_v63 = vmul.f32 0.044715, %v323_v60  ;;  %v327_v14 = vmul.f32 0.5, %v323_v60 }
  0xf3   : > { %v330_v0 = vmul.f32 0.044715, %v325_v62  ;;  %v328_v12 = vmul.f32 0.5, %v325_v62 }
  0xf4   : > { %v331_v1 = vmul.f32 %v329_v63, %v323_v60 }
  0xf5   : > { %v332_v2 = vmul.f32 %v330_v0, %v325_v62 }
  0xf6   : > { %v333_v3 = vmul.f32 %v331_v1, %v323_v60 }
  0xf7   : > { %v334_v4 = vmul.f32 %v332_v2, %v325_v62 }
  0xf8   : > { %v335_v5 = vadd.f32 %v333_v3, %v323_v60 }
  0xf9   : > { %v336_v6 = vadd.f32 %v334_v4, %v325_v62 }
  0xfa   : > { %v337_v7 = vmul.f32 0.7978846, %v335_v5 }
  0xfb   : > { %v338_v8 = vmul.f32 0.7978846, %v336_v6 }
  0xfc   : > { %622 = vtanh.f32 %v337_v7 }
  0xfd   : > { %624 = vtanh.f32 %v338_v8 }
 0x106   : > { %v623_v9 = vpop.eup %622 }
 0x107   : > { %v625_v10 = vpop.eup %624  ;;  %v341_v11 = vadd.f32 1.0, %v623_v9 }
 0x108   : > { %v342_v13 = vadd.f32 1.0, %v625_v10 }
 0x109   : > { %v343_v16 = vmul.f32 %v341_v11, %v327_v14 }
 0x10a   : > { %v344_v15 = vmul.f32 %v342_v13, %v328_v12 }
 0x10c   : > { %531 = vmatprep.mubr.msk.f32.mxu1 %vm373_vm4, %v344_v15 }
 0x10d   : > { %442 = vmatmul.mubr.f32.vlgmr.msra.gmra.mrb[0].mxu1 %v343_v16 }
 0x1e0   : > { %v443_v18 = vpop.f32.mrb[0].mxu1 }
 0x1e1   : > { %v444_v19 = vadd.f32 %v530_v17, %v443_v18  ;;  %v445_v20 = vpop.f32.mrb[1].mxu1 }
 0x1e3   : > { %447 = vst.msk [vmem:[%s215_s25] sm:$0xff] %vm245_vm3, %v444_v19 }
 0x1e4   : > { %639 = shalt.err (!%p636_p3)
}
 0x1e5   : > { %s640_s13 = scalar_lea.hbm %s900_s7, 128  ;;  %s644_s15 = scalar_lea.hbm %s948_s5, 256 }
 0x1e6   : > { %p641_p4 = scmp.ne.s32.totalorder %s900_s7, %s640_s13  ;;  %p645_p9 = scmp.lt.u32.totalorder %s900_s7, %s948_s5 }
 0x1e7   : > { %p646_p10 = scmp.lt.u32.totalorder %s644_s15, %s640_s13  ;;  %p648_p12 = scmp.lt.u32.totalorder %s640_s13, %s900_s7 }
 0x1e8   : > { %p642_p7 = pnand %p641_p4, %p762_p5 }
 0x1e9   : > { %p647_p11 = por %p646_p10, %p645_p9 }
 0x1ea   : > { %p643_p8 = pneg %p642_p7 }
 0x1eb   : > { %p649_p13 = por %p648_p12, %p647_p11 }
 0x1ed   : > { %p650_p0 = pnand %p649_p13, %p643_p8 }
 0x1ef   : > { %653 = shalt.err (!%p650_p0)
}
 0x1f0   : > { %580 = dma.vmem_to_hbm [thread:$0]  (%p762_p5), %s902_s26, 128, %s900_s7, %s449_s8  }
 0x1f1 PF: > { %p586_p1 = scmp.ge.s32.totalorder %s688_s21, 2  ;;  %s474_s23 = sand.u32 1, %s676_s18  }
 0x1f2   : > { %s475_s25 = scalar_lea.sflag [#allocation3], %s474_s23 }
 0x1f3   : > { %p583_p2 = pnand %p586_p1, %p766_p6 }
 0x1f5   : > { %671 = dma.done.wait (!%p583_p2), %s475_s25, 128  }
 0x1f6   : > { %673 = vsyncadd (!%p583_p2), %s475_s25, 4294967168  ;;  %p15_p3 = scmp.ge.s32.totalorder %s749_s24, 4   ;;  %s951_s18 = smov %s680_s19 }
 0x1f7   : > { %s952_s19 = smov %s684_s20  ;;  %s953_s20 = smov %s760_s27 }
 0x1f8   : > { %s954_s21 = smov %s749_s24  ;;  %17 = sbr.rel (!%p15_p3) target bundleno = 3 (0x3), region = 75 }
 0x1ff   :  { %480 = vsyncpa [#allocation3], 1 }
 0x200   :  { %482 = vsyncpa [#allocation3 + $0x1], 1 }

</bundles_post_ra>
